<compile_context>
chip_gen: v5e
topology: v5e:2x2
jax: 0.10.0
libtpu: 0.0.40
codegen_flags: <defaults>
</compile_context>

<pallas_src>
import functools

import jax
import jax.numpy as jnp
from jax import lax
from jax.experimental import pallas as pl
from jax.experimental.pallas import tpu as pltpu

LANE_W = 1024          # lane-dense row width (multiple of 128)
MAX_BLOCK_ROWS = 512   # 512 x 1024 f32 = 2 MiB per input per grid step
NUM_PARTITIONS = 2     # leading 'parallel' grid axis (v7x: 2 TensorCores)


def _bce_sum_kernel(x_ref, y_ref, o_ref, acc_ref, *,
                    n_elem, n_blocks, steps_per_part, block_rows, logits):
    """Accumulates sum(BCE(x, y)) over this partition's blocks.

    Writes the per-partition partial sums (reduced over rows, lane-dense)
    to o_ref on the partition's last step.
    """
    p = pl.program_id(0)   # partition ('parallel' axis)
    s = pl.program_id(1)   # step within partition ('arbitrary' reduction axis)

    @pl.when(s == 0)
    def _init():
        acc_ref[...] = jnp.zeros_like(acc_ref)

    x = x_ref[...].astype(jnp.float32)
    y = y_ref[...].astype(jnp.float32)

    if logits:
        # Numerically stable BCE-with-logits (matches PyTorch):
        #   max(x, 0) - x*y + log(1 + exp(-|x|))
        bce = jnp.maximum(x, 0.0) - x * y + jnp.log1p(jnp.exp(-jnp.abs(x)))
    else:
        # F.binary_cross_entropy: -(y*log(x) + (1-y)*log(1-x)), logs clamped at -100.
        log_x = jnp.maximum(jnp.log(x), -100.0)
        log_1mx = jnp.maximum(jnp.log(1.0 - x), -100.0)
        bce = -(y * log_x + (1.0 - y) * log_1mx)

    # Intended (unclamped) block id. The index_map clamps the DMA source block
    # so it never reads past the array; the mask below zeroes every element of
    # such duplicate blocks as well as padding / partial-edge garbage.
    block_id = p * steps_per_part + s

    @pl.when(block_id < n_blocks - 1)
    def _interior():
        # Interior blocks contain only valid elements: no mask work needed.
        acc_ref[...] += bce

    @pl.when(block_id >= n_blocks - 1)
    def _edge():
        row_idx = lax.broadcasted_iota(jnp.int32, (block_rows, LANE_W), 0)
        col_idx = lax.broadcasted_iota(jnp.int32, (block_rows, LANE_W), 1)
        flat_idx = (block_id * block_rows + row_idx) * LANE_W + col_idx
        acc_ref[...] += jnp.where(flat_idx < n_elem, bce, 0.0)

    @pl.when(s == steps_per_part - 1)
    def _finalize():
        o_ref[...] = jnp.sum(acc_ref[...], axis=0, keepdims=True).reshape(o_ref.shape)


def focal_loss(inputs, targets, alpha=1.0, gamma=2.0, logits=True, reduce=True):
    """Pallas implementation of FocalLoss.forward."""
    n_elem = inputs.size

    x_flat = inputs.reshape(-1)
    y_flat = targets.reshape(-1)

    # Minimal padding: just enough to view the flat array as (rows, LANE_W)
    # with rows >= 8. No pad (no extra HBM copy) when already aligned.
    padded = max(8 * LANE_W, ((n_elem + LANE_W - 1) // LANE_W) * LANE_W)
    if padded != n_elem:
        x_flat = jnp.pad(x_flat, (0, padded - n_elem))
        y_flat = jnp.pad(y_flat, (0, padded - n_elem))
    rows = padded // LANE_W
    x2d = x_flat.reshape(rows, LANE_W)
    y2d = y_flat.reshape(rows, LANE_W)

    block_rows = min(MAX_BLOCK_ROWS, (rows // 8) * 8)
    n_blocks = (rows + block_rows - 1) // block_rows
    p_parts = NUM_PARTITIONS if n_blocks >= NUM_PARTITIONS else 1
    steps = (n_blocks + p_parts - 1) // p_parts

    def data_map(p, s):
        # Clamp so the DMA never targets a block past the end of the array;
        # the kernel masks the (duplicate) data of clamped blocks to zero.
        return (jnp.minimum(p * steps + s, n_blocks - 1), 0)

    kernel = functools.partial(
        _bce_sum_kernel,
        n_elem=n_elem, n_blocks=n_blocks, steps_per_part=steps,
        block_rows=block_rows, logits=logits)

    partials = pl.pallas_call(
        kernel,
        out_shape=jax.ShapeDtypeStruct((p_parts, 1, LANE_W), jnp.float32),
        grid_spec=pltpu.PrefetchScalarGridSpec(
            num_scalar_prefetch=0,
            grid=(p_parts, steps),
            in_specs=[
                pl.BlockSpec((block_rows, LANE_W), data_map),
                pl.BlockSpec((block_rows, LANE_W), data_map),
            ],
            out_specs=pl.BlockSpec((1, 1, LANE_W), lambda p, s: (p, 0, 0)),
            scratch_shapes=[pltpu.VMEM((block_rows, LANE_W), jnp.float32)],
        ),
        compiler_params=pltpu.CompilerParams(
            dimension_semantics=("parallel", "arbitrary"),
            vmem_limit_bytes=32 * 1024 * 1024,
        ),
    )(x2d, y2d)

    # Scalar tail, mirroring the PyTorch module exactly:
    # BCE_loss is the *mean* (reduce=None -> reduction='mean' fallback).
    bce_loss = jnp.sum(partials) / jnp.float32(n_elem)
    pt = jnp.exp(-bce_loss)
    f_loss = alpha * (1.0 - pt) ** gamma * bce_loss
    if reduce:
        return jnp.mean(f_loss)  # mean of a scalar == scalar
    return f_loss


def _reference(inputs, targets, alpha=1.0, gamma=2.0):
    x = inputs.astype(jnp.float32)
    y = targets.astype(jnp.float32)
    bce = jnp.maximum(x, 0.0) - x * y + jnp.log1p(jnp.exp(-jnp.abs(x)))
    bce_loss = jnp.mean(bce)
    pt = jnp.exp(-bce_loss)
    return jnp.mean(alpha * (1.0 - pt) ** gamma * bce_loss)


if __name__ == "__main__":
    key = jax.random.PRNGKey(0)
    k1, k2, k3, k4 = jax.random.split(key, 4)

    # Small NCHW example consistent with a per-pixel binary prediction map.
    x = jax.random.normal(k1, (2, 4, 16, 16), dtype=jnp.float32)  # logits
    t = (jax.random.uniform(k2, (2, 4, 16, 16)) > 0.5).astype(jnp.float32)

    out = focal_loss(x, t, alpha=1.0, gamma=2.0, logits=True, reduce=True)
    out = jax.block_until_ready(out)
    ref = _reference(x, t)
    assert jnp.allclose(out, ref, rtol=1e-5, atol=1e-6), (out, ref)

    # Second small check: odd element count -> exercises the multi-block grid,
    # the 2-way partition split and the masked edge block.
    x2 = jax.random.normal(k3, (2, 4, 34, 34), dtype=jnp.float32)
    t2 = (jax.random.uniform(k4, (2, 4, 34, 34)) > 0.5).astype(jnp.float32)
    out2 = focal_loss(x2, t2, alpha=1.0, gamma=2.0, logits=True, reduce=True)
    out2 = jax.block_until_ready(out2)
    ref2 = _reference(x2, t2)
    assert jnp.allclose(out2, ref2, rtol=1e-5, atol=1e-6), (out2, ref2)

    print("KERNEL_OK")
</pallas_src>

<mosaic_0001>
module attributes {stable_mosaic.version = 11 : i64} {
  func.func @_bce_sum_kernel(%arg0: i32, %arg1: i32, %arg2: memref<8x1024xf32, #tpu.memory_space<vmem>>, %arg3: memref<8x1024xf32, #tpu.memory_space<vmem>>, %arg4: memref<1x1x1024xf32, #tpu.memory_space<vmem>>, %arg5: memref<8x1024xf32, #tpu.memory_space<vmem>>) attributes {dimension_semantics = [#tpu.dimension_semantics<parallel>, #tpu.dimension_semantics<arbitrary>], iteration_bounds = array<i64: 1, 1>, scalar_prefetch = 0 : i64, scratch_operands = 1 : i64, tpu.core_type = #tpu.core_type<tc>, window_params = [{transform_indices = @transform_0, window_bounds = array<i64: 8, 1024>}, {transform_indices = @transform_1, window_bounds = array<i64: 8, 1024>}, {transform_indices = @transform_2, window_bounds = array<i64: 1, 1, 1024>}]} {
    %c0_i32 = arith.constant 0 : i32
    %0 = arith.cmpi eq, %arg1, %c0_i32 : i32
    %1 = arith.extui %0 : i1 to i32
    %c0_i32_0 = arith.constant 0 : i32
    %2 = arith.cmpi ne, %1, %c0_i32_0 : i32
    scf.if %2 {
      %cst_11 = arith.constant 0.000000e+00 : f32
      %26 = vector.broadcast %cst_11 : f32 to vector<8x1024xf32>
      %c0_12 = arith.constant 0 : index
      %c0_13 = arith.constant 0 : index
      %27 = vector.load %arg5[%c0_12, %c0_13] : memref<8x1024xf32, #tpu.memory_space<vmem>>, vector<8x1024xf32>
      tpu.vector_store %arg5[%c0_12, %c0_13], %26 {strides = array<i32>} : memref<8x1024xf32, #tpu.memory_space<vmem>>, vector<8x1024xf32>,
    } else {
    }
    %c0 = arith.constant 0 : index
    %c0_1 = arith.constant 0 : index
    %3 = vector.load %arg2[%c0, %c0_1] : memref<8x1024xf32, #tpu.memory_space<vmem>>, vector<8x1024xf32>
    %c0_2 = arith.constant 0 : index
    %c0_3 = arith.constant 0 : index
    %4 = vector.load %arg3[%c0_2, %c0_3] : memref<8x1024xf32, #tpu.memory_space<vmem>>, vector<8x1024xf32>
    %cst = arith.constant 0.000000e+00 : f32
    %5 = vector.broadcast %cst : f32 to vector<8x1024xf32>
    %6 = arith.maximumf %3, %5 : vector<8x1024xf32>
    %7 = arith.mulf %3, %4 : vector<8x1024xf32>
    %8 = arith.subf %6, %7 : vector<8x1024xf32>
    %9 = math.absf %3 : vector<8x1024xf32>
    %cst_4 = arith.constant 0.000000e+00 : f32
    %10 = vector.broadcast %cst_4 : f32 to vector<8x1024xf32>
    %11 = arith.subf %10, %9 : vector<8x1024xf32>
    %12 = math.exp %11 : vector<8x1024xf32>
    %13 = math.log1p %12 : vector<8x1024xf32>
    %14 = arith.addf %8, %13 : vector<8x1024xf32>
    %c1_i32 = arith.constant 1 : i32
    %15 = arith.muli %arg0, %c1_i32 : i32
    %16 = arith.addi %15, %arg1 : i32
    %c0_i32_5 = arith.constant 0 : i32
    %17 = arith.cmpi slt, %16, %c0_i32_5 : i32
    %18 = arith.extui %17 : i1 to i32
    %c0_i32_6 = arith.constant 0 : i32
    %19 = arith.cmpi ne, %18, %c0_i32_6 : i32
    scf.if %19 {
      %c0_11 = arith.constant 0 : index
      %c0_12 = arith.constant 0 : index
      %26 = vector.load %arg5[%c0_11, %c0_12] : memref<8x1024xf32, #tpu.memory_space<vmem>>, vector<8x1024xf32>
      %27 = arith.addf %26, %14 : vector<8x1024xf32>
      %c0_13 = arith.constant 0 : index
      %c0_14 = arith.constant 0 : index
      %28 = vector.load %arg5[%c0_13, %c0_14] : memref<8x1024xf32, #tpu.memory_space<vmem>>, vector<8x1024xf32>
      tpu.vector_store %arg5[%c0_13, %c0_14], %27 {strides = array<i32>} : memref<8x1024xf32, #tpu.memory_space<vmem>>, vector<8x1024xf32>,
    } else {
    }
    %c0_i32_7 = arith.constant 0 : i32
    %20 = arith.cmpi sge, %16, %c0_i32_7 : i32
    %21 = arith.extui %20 : i1 to i32
    %c0_i32_8 = arith.constant 0 : i32
    %22 = arith.cmpi ne, %21, %c0_i32_8 : i32
    scf.if %22 {
      %26 = tpu.iota {dimensions = array<i32: 0>} : vector<8x1024xi32>
      %27 = tpu.iota {dimensions = array<i32: 1>} : vector<8x1024xi32>
      %c8_i32 = arith.constant 8 : i32
      %28 = arith.muli %16, %c8_i32 : i32
      %29 = vector.broadcast %28 : i32 to vector<8x1024xi32>
      %30 = arith.addi %29, %26 : vector<8x1024xi32>
      %c1024_i32 = arith.constant 1024 : i32
      %31 = vector.broadcast %c1024_i32 : i32 to vector<8x1024xi32>
      %32 = arith.muli %30, %31 : vector<8x1024xi32>
      %33 = arith.addi %32, %27 : vector<8x1024xi32>
      %c0_11 = arith.constant 0 : index
      %c0_12 = arith.constant 0 : index
      %34 = vector.load %arg5[%c0_11, %c0_12] : memref<8x1024xf32, #tpu.memory_space<vmem>>, vector<8x1024xf32>
      %c2048_i32 = arith.constant 2048 : i32
      %35 = vector.broadcast %c2048_i32 : i32 to vector<8x1024xi32>
      %36 = arith.cmpi slt, %33, %35 : vector<8x1024xi32>
      %cst_13 = arith.constant 0.000000e+00 : f32
      %37 = vector.broadcast %cst_13 : f32 to vector<8x1024xf32>
      %38 = arith.select %36, %14, %37 : vector<8x1024xi1>, vector<8x1024xf32>
      %39 = arith.addf %34, %38 : vector<8x1024xf32>
      %c0_14 = arith.constant 0 : index
      %c0_15 = arith.constant 0 : index
      %40 = vector.load %arg5[%c0_14, %c0_15] : memref<8x1024xf32, #tpu.memory_space<vmem>>, vector<8x1024xf32>
      tpu.vector_store %arg5[%c0_14, %c0_15], %39 {strides = array<i32>} : memref<8x1024xf32, #tpu.memory_space<vmem>>, vector<8x1024xf32>,
    } else {
    }
    %c0_i32_9 = arith.constant 0 : i32
    %23 = arith.cmpi eq, %arg1, %c0_i32_9 : i32
    %24 = arith.extui %23 : i1 to i32
    %c0_i32_10 = arith.constant 0 : i32
    %25 = arith.cmpi ne, %24, %c0_i32_10 : i32
    scf.if %25 {
      %c0_11 = arith.constant 0 : index
      %c0_12 = arith.constant 0 : index
      %26 = vector.load %arg5[%c0_11, %c0_12] : memref<8x1024xf32, #tpu.memory_space<vmem>>, vector<8x1024xf32>
      %cst_13 = arith.constant dense<0.000000e+00> : vector<1024xf32>
      %27 = vector.multi_reduction <add>, %26, %cst_13 [0] : vector<8x1024xf32> to vector<1024xf32>
      %28 = vector.shape_cast %27 : vector<1024xf32> to vector<1x1024xf32>
      %29 = vector.shape_cast %28 : vector<1x1024xf32> to vector<1x1x1024xf32>
      %c0_14 = arith.constant 0 : index
      %c0_15 = arith.constant 0 : index
      %c0_16 = arith.constant 0 : index
      %30 = vector.load %arg4[%c0_14, %c0_15, %c0_16] : memref<1x1x1024xf32, #tpu.memory_space<vmem>>, vector<1x1x1024xf32>
      tpu.vector_store %arg4[%c0_14, %c0_15, %c0_16], %29 {strides = array<i32>} : memref<1x1x1024xf32, #tpu.memory_space<vmem>>, vector<1x1x1024xf32>,
    } else {
    }
    return
  }
  func.func @transform_0(%arg0: i32, %arg1: i32) -> (i32, i32) {
    %c1_i32 = arith.constant 1 : i32
    %0 = arith.muli %arg0, %c1_i32 : i32
    %1 = arith.addi %0, %arg1 : i32
    %c0_i32 = arith.constant 0 : i32
    %2 = arith.minsi %1, %c0_i32 : i32
    %c0_i32_0 = arith.constant 0 : i32
    %c0_i32_1 = arith.constant 0 : i32
    return %2, %c0_i32_0 : i32, i32
  }
  func.func @transform_1(%arg0: i32, %arg1: i32) -> (i32, i32) {
    %c1_i32 = arith.constant 1 : i32
    %0 = arith.muli %arg0, %c1_i32 : i32
    %1 = arith.addi %0, %arg1 : i32
    %c0_i32 = arith.constant 0 : i32
    %2 = arith.minsi %1, %c0_i32 : i32
    %c0_i32_0 = arith.constant 0 : i32
    %c0_i32_1 = arith.constant 0 : i32
    return %2, %c0_i32_0 : i32, i32
  }
  func.func @transform_2(%arg0: i32, %arg1: i32) -> (i32, i32, i32) {
    %c0_i32 = arith.constant 0 : i32
    %c0_i32_0 = arith.constant 0 : i32
    %c0_i32_1 = arith.constant 0 : i32
    return %arg0, %c0_i32, %c0_i32_0 : i32, i32, i32
  }
}

</mosaic_0001>

<bundles_post_ra>
// kernel: tpu_custom_call.1
= control target key start
LH: loop header
LB: loop body
LE: loop exit
PB: predicated region body
PF: predicated region fallthrough
CT: control target
= control target key end

     0   :  { %7 = vsyncpa [#allocation4], 0  ;;  %s678_s0 = inlined_call_operand.hbm [shape: f32[8,1024], index: 0, kind: input, shape index: {}]   ;;  %s679_s1 = inlined_call_operand.hbm [shape: f32[8,1024], index: 1, kind: input, shape index: {}]   ;;  %s680_s2 = inlined_call_operand.hbm [shape: f32[1,1,1024], index: 2, kind: output, shape index: {}]  }
   0x1   :  { %8 = vsyncpa [#allocation7], 0 }
   0x2   :  { %9 = vsyncpa [#allocation5], 0  ;;  %s21_s11 = sshll.u32 %s678_s0, 4  ;;  %s543_s12 = smov [#allocation3]   ;;  %s22_s11 = int_to_ptr.hbm [resolvable:$true] %s21_s11 }
   0x3   :  { %s23_s13 = sshll.u32 %s543_s12, 4  ;;  %s38_s16 = sshll.u32 %s679_s1, 4  ;;  %s24_s13 = int_to_ptr.vmem [resolvable:$true] %s23_s13  ;;  %s39_s16 = int_to_ptr.hbm [resolvable:$true] %s38_s16 }
   0x4   :  { %26 = dma.hbm_to_vmem [thread:$0]  %s22_s11, 1024, %s24_s13, [#allocation4]  }
   0x5   :  { %s544_s17 = smov [#allocation6]  }
   0x6   :  { %s40_s18 = sshll.u32 %s544_s17, 4  ;;  %s41_s18 = int_to_ptr.vmem [resolvable:$true] %s40_s18 }
   0x7   :  { %43 = dma.hbm_to_vmem [thread:$0]  %s39_s16, 1024, %s41_s18, [#allocation7]  }
   0x8   :  { %537 = dma.done.wait [#allocation4], 1024  }
   0x9   :  { %538 = vsyncadd [#allocation4], 4294966272 }
   0xa   :  { %539 = dma.done.wait [#allocation7], 1024  }
   0xb   :  { %540 = vsyncadd [#allocation7], 4294966272  ;;  %v70_v0 = vld [vmem:[#allocation3] sm:$0xff]  ;;  %v71_v1 = vld [vmem:[#allocation3 + $0x8] sm:$0xff]  ;;  %v255_v42 = vlaneseq  ;;  %s545_s0 = smov [#allocation8]   ;;  %s415_s21 = sshll.u32 %s680_s2, 4  ;;  %s416_s21 = int_to_ptr.hbm [resolvable:$true] %s415_s21 }
   0xc   :  { %v72_v2 = vld [vmem:[#allocation3 + $0x10] sm:$0xff]  ;;  %v73_v3 = vld [vmem:[#allocation3 + $0x18] sm:$0xff]  ;;  %v74_v4 = vld [vmem:[#allocation3 + $0x20] sm:$0xff]  ;;  %v86_v12 = vmax.f32 %v70_v0, 0.0  ;;  %v87_v13 = vmax.f32 %v71_v1, 0.0  ;;  %s413_s1 = sshll.u32 %s545_s0, 4  ;;  %s414_s1 = int_to_ptr.vmem [resolvable:$true] %s413_s1 }
   0xd   :  { %v75_v5 = vld [vmem:[#allocation3 + $0x28] sm:$0xff]  ;;  %v76_v6 = vld [vmem:[#allocation3 + $0x30] sm:$0xff]  ;;  %v77_v7 = vld [vmem:[#allocation3 + $0x38] sm:$0xff]  ;;  %v88_v18 = vmax.f32 %v72_v2, 0.0  ;;  %v89_v19 = vmax.f32 %v73_v3, 0.0  ;;  %v90_v20 = vmax.f32 %v74_v4, 0.0 }
   0xe   :  { %v78_v8 = vld [vmem:[#allocation6] sm:$0xff]  ;;  %v79_v9 = vld [vmem:[#allocation6 + $0x8] sm:$0xff]  ;;  %v80_v10 = vld [vmem:[#allocation6 + $0x10] sm:$0xff]  ;;  %v91_v23 = vmax.f32 %v75_v5, 0.0  ;;  %v92_v24 = vmax.f32 %v76_v6, 0.0  ;;  %v93_v25 = vmax.f32 %v77_v7, 0.0 }
   0xf   :  { %v81_v11 = vld [vmem:[#allocation6 + $0x18] sm:$0xff]  ;;  %v94_v14 = vmul.f32 %v78_v8, %v70_v0  ;;  %v82_v15 = vld [vmem:[#allocation6 + $0x20] sm:$0xff]  ;;  %v83_v16 = vld [vmem:[#allocation6 + $0x28] sm:$0xff]  ;;  %v95_v21 = vmul.f32 %v79_v9, %v71_v1  ;;  %v96_v26 = vmul.f32 %v80_v10, %v72_v2  ;;  %v110_v30 = vand.u32 2147483647, %v70_v0 }
  0x10   :  { %v84_v17 = vld [vmem:[#allocation6 + $0x30] sm:$0xff]  ;;  %v85_v22 = vld [vmem:[#allocation6 + $0x38] sm:$0xff]  ;;  %v97_v27 = vmul.f32 %v81_v11, %v73_v3  ;;  %v98_v28 = vmul.f32 %v82_v15, %v74_v4  ;;  %v99_v29 = vmul.f32 %v83_v16, %v75_v5  ;;  %v111_v34 = vand.u32 2147483647, %v71_v1 }
  0x11   :  { %v100_v31 = vmul.f32 %v84_v17, %v76_v6  ;;  %v101_v32 = vmul.f32 %v85_v22, %v77_v7  ;;  %v567_v33 = vsub.f32 %v86_v12, %v94_v14  ;;  %v569_v35 = vsub.f32 %v87_v13, %v95_v21 }
  0x12   :  { %v112_v36 = vand.u32 2147483647, %v72_v2  ;;  %v113_v37 = vand.u32 2147483647, %v73_v3  ;;  %v114_v38 = vand.u32 2147483647, %v74_v4  ;;  %v571_v51 = vsub.f32 %v88_v18, %v96_v26 }
  0x13   :  { %v115_v39 = vand.u32 2147483647, %v75_v5  ;;  %v116_v40 = vand.u32 2147483647, %v76_v6  ;;  %v117_v41 = vand.u32 2147483647, %v77_v7  ;;  %v573_v55 = vsub.f32 %v89_v19, %v97_v27 }
  0x14   :  { %v118_v43 = vsub.f32 0.0, %v110_v30  ;;  %v119_v44 = vsub.f32 0.0, %v111_v34  ;;  %v120_v45 = vsub.f32 0.0, %v112_v36  ;;  %v121_v46 = vsub.f32 0.0, %v113_v37 }
  0x15   :  { %v122_v47 = vsub.f32 0.0, %v114_v38  ;;  %v123_v48 = vsub.f32 0.0, %v115_v39  ;;  %v124_v49 = vsub.f32 0.0, %v116_v40  ;;  %v125_v50 = vsub.f32 0.0, %v117_v41 }
  0x16   :  { %v126_v52 = vmul.f32 1.442695, %v118_v43  ;;  %v128_v53 = vmul.f32 1.442695, %v119_v44  ;;  %v130_v54 = vmul.f32 1.442695, %v120_v45  ;;  %v575_v56 = vsub.f32 %v90_v20, %v98_v28 }
  0x17   :  { %v577_v57 = vsub.f32 %v91_v23, %v99_v29  ;;  %v132_v58 = vmul.f32 1.442695, %v121_v46  ;;  %v579_v59 = vsub.f32 %v92_v24, %v100_v31  ;;  %v134_v60 = vmul.f32 1.442695, %v122_v47 }
  0x18   :  { %433 = vpow2.f32 %v126_v52  ;;  %v256_v61 = vshrl.u32 %v255_v42, 7  ;;  %v581_v62 = vsub.f32 %v93_v25, %v101_v32  ;;  %v136_v63 = vmul.f32 1.442695, %v123_v48 }
  0x19   :  { %435 = vpow2.f32 %v128_v53  ;;  %v258_v0 = vand.u32 127, %v255_v42  ;;  %v138_v1 = vmul.f32 1.442695, %v124_v49  ;;  %v140_v2 = vmul.f32 1.442695, %v125_v50 }
  0x1a   :  { %437 = vpow2.f32 %v130_v54  ;;  %v583_v3 = vmul.u32 1024, %v256_v61 }
  0x1b   :  { %439 = vpow2.f32 %v132_v58  ;;  %v259_v4 = vadd.s32 128, %v258_v0  ;;  %v260_v5 = vadd.s32 256, %v258_v0  ;;  %v261_v6 = vadd.s32 384, %v258_v0 }
  0x1c   :  { %441 = vpow2.f32 %v134_v60  ;;  %v262_v7 = vadd.s32 512, %v258_v0  ;;  %v263_v8 = vadd.s32 640, %v258_v0  ;;  %v585_v9 = vadd.s32 768, %v258_v0 }
  0x1d   :  { %443 = vpow2.f32 %v136_v63  ;;  %v587_v10 = vadd.s32 896, %v258_v0  ;;  %v590_v11 = vadd.s32 %v583_v3, %v258_v0  ;;  %v593_v12 = vadd.s32 %v583_v3, %v259_v4 }
  0x1e   :  { %v434_v13 = vpop.eup %433  ;;  %445 = vpow2.f32 %v138_v1  ;;  %v596_v14 = vadd.s32 %v583_v3, %v260_v5  ;;  %v599_v15 = vadd.s32 %v583_v3, %v261_v6  ;;  %v602_v16 = vadd.s32 %v583_v3, %v262_v7 }
  0x1f   :  { %v436_v17 = vpop.eup %435  ;;  %447 = vpow2.f32 %v140_v2  ;;  %v142_v18 = vadd.f32 1.0, %v434_v13  ;;  %v145_v19 = vmul.f32 -0.5, %v434_v13  ;;  %v148_v20 = vand.u32 2147483647, %v434_v13 }
  0x20   :  { %v438_v21 = vpop.eup %437  ;;  %v151_v22 = vadd.f32 1.0, %v436_v17  ;;  %v154_v23 = vmul.f32 -0.5, %v436_v17  ;;  %v157_v24 = vand.u32 2147483647, %v436_v17  ;;  %v605_v25 = vadd.s32 %v583_v3, %v263_v8 }
  0x21   :  { %v440_v26 = vpop.eup %439  ;;  %449 = vlog2.f32 %v142_v18  ;;  %v146_v27 = vadd.f32 1.0, %v145_v19  ;;  %vm607_vm0 = vcmp.lt.f32.partialorder %v148_v20, 0.0004427343  ;;  %v160_v29 = vadd.f32 1.0, %v438_v21 }
  0x22   :  { %v442_v30 = vpop.eup %441  ;;  %451 = vlog2.f32 %v151_v22  ;;  %v155_v31 = vadd.f32 1.0, %v154_v23  ;;  %vm611_vm1 = vcmp.lt.f32.partialorder %v157_v24, 0.0004427343  ;;  %v163_v34 = vmul.f32 -0.5, %v438_v21 }
  0x23   :  { %v444_v36 = vpop.eup %443  ;;  %v147_v37 = vmul.f32 %v434_v13, %v146_v27  ;;  %453 = vlog2.f32 %v160_v29  ;;  %v166_v38 = vand.u32 2147483647, %v438_v21  ;;  %v169_v39 = vadd.f32 1.0, %v440_v26 }
  0x24   :  { %v446_v40 = vpop.eup %445  ;;  %v156_v41 = vmul.f32 %v436_v17, %v155_v31  ;;  %v164_v42 = vadd.f32 1.0, %v163_v34  ;;  %v172_v43 = vmul.f32 -0.5, %v440_v26  ;;  %v175_v44 = vand.u32 2147483647, %v440_v26 }
  0x25   :  { %v448_v45 = vpop.eup %447  ;;  %vm615_vm2 = vcmp.lt.f32.partialorder %v166_v38, 0.0004427343  ;;  %455 = vlog2.f32 %v169_v39  ;;  %v178_v47 = vadd.f32 1.0, %v442_v30  ;;  %v181_v48 = vmul.f32 -0.5, %v442_v30 }
  0x26   :  { %v165_v49 = vmul.f32 %v438_v21, %v164_v42  ;;  %v173_v50 = vadd.f32 1.0, %v172_v43  ;;  %vm619_vm3 = vcmp.lt.f32.partialorder %v175_v44, 0.0004427343  ;;  %v184_v53 = vand.u32 2147483647, %v442_v30 }
  0x27   :  { %v450_v54 = vpop.eup %449  ;;  %457 = vlog2.f32 %v178_v47  ;;  %v182_v58 = vadd.f32 1.0, %v181_v48  ;;  %v187_v60 = vadd.f32 1.0, %v444_v36  ;;  %v190_v61 = vmul.f32 -0.5, %v444_v36 }
  0x28   :  { %v452_v63 = vpop.eup %451  ;;  %v144_v0 = vmul.f32 0.6931472, %v450_v54  ;;  %v174_v1 = vmul.f32 %v440_v26, %v173_v50  ;;  %vm623_vm4 = vcmp.lt.f32.partialorder %v184_v53, 0.0004427343  ;;  %v193_v4 = vand.u32 2147483647, %v444_v36 }
  0x29   :  { %v454_v5 = vpop.eup %453  ;;  %v153_v6 = vmul.f32 0.6931472, %v452_v63  ;;  %v183_v7 = vmul.f32 %v442_v30, %v182_v58  ;;  %459 = vlog2.f32 %v187_v60  ;;  %v191_v8 = vadd.f32 1.0, %v190_v61 }
  0x2a   :  { %v150_v13 = vsel %vm607_vm0, %v147_v37, %v144_v0  ;;  %v162_v17 = vmul.f32 0.6931472, %v454_v5  ;;  %vm629_vm5 = vcmp.lt.f32.partialorder %v193_v4, 0.0004427343  ;;  %v196_v19 = vadd.f32 1.0, %v446_v40 }
  0x2b   :  { %v456_v20 = vpop.eup %455  ;;  %v159_v21 = vsel %vm611_vm1, %v156_v41, %v153_v6  ;;  %v192_v22 = vmul.f32 %v444_v36, %v191_v8  ;;  %v199_v23 = vmul.f32 -0.5, %v446_v40  ;;  %v202_v24 = vand.u32 2147483647, %v446_v40 }
  0x2c   :  { %v168_v26 = vsel %vm615_vm2, %v165_v49, %v162_v17  ;;  %v171_v27 = vmul.f32 0.6931472, %v456_v20  ;;  %461 = vlog2.f32 %v196_v19  ;;  %v205_v28 = vadd.f32 1.0, %v448_v45 }
  0x2d   :  { %v458_v29 = vpop.eup %457  ;;  %v200_v30 = vadd.f32 1.0, %v199_v23  ;;  %vm637_vm6 = vcmp.lt.f32.partialorder %v202_v24, 0.0004427343  ;;  %v208_v34 = vmul.f32 -0.5, %v448_v45  ;;  %v211_v37 = vand.u32 2147483647, %v448_v45 }
  0x2e   :  { %v177_v32 = vsel %vm619_vm3, %v174_v1, %v171_v27  ;;  %v180_v36 = vmul.f32 0.6931472, %v458_v29  ;;  %463 = vlog2.f32 %v205_v28  ;;  %v214_v38 = vadd.f32 %v150_v13, %v567_v33 }
  0x2f   :  { %v460_v39 = vpop.eup %459  ;;  %v201_v41 = vmul.f32 %v446_v40, %v200_v30  ;;  %v209_v42 = vadd.f32 1.0, %v208_v34  ;;  %vm644_vm7 = vcmp.lt.f32.partialorder %v211_v37, 0.0004427343  ;;  %v215_v44 = vadd.f32 %v159_v21, %v569_v35 }
  0x30   :  { %v186_v46 = vsel %vm623_vm4, %v183_v7, %v180_v36  ;;  %v189_v47 = vmul.f32 0.6931472, %v460_v39  ;;  %v216_v48 = vadd.f32 %v168_v26, %v571_v51  ;;  %v217_v49 = vadd.f32 %v177_v32, %v573_v55 }
  0x31   :  { %v210_v50 = vmul.f32 %v448_v45, %v209_v42  ;;  %v218_v33 = vadd.f32 %v186_v46, %v575_v56  ;;  %v276_v40 = vadd.s32 %v583_v3, %v585_v9  ;;  %v277_v52 = vadd.s32 %v583_v3, %v587_v10 }
  0x32   :  { %v462_v53 = vpop.eup %461  ;;  %v195_v35 = vsel %vm629_vm5, %v192_v22, %v189_v47  ;;  %vm286_vm8 = vcmp.lt.s32.totalorder %v590_v11, 2048  ;;  %vm287_vm9 = vcmp.lt.s32.totalorder %v593_v12, 2048  ;;  %vm288_vm10 = vcmp.lt.s32.totalorder %v596_v14, 2048 }
  0x33   :  { %v198_v51 = vmul.f32 0.6931472, %v462_v53  ;;  %v219_v55 = vadd.f32 %v195_v35, %v577_v57  ;;  %vm289_vm11 = vcmp.lt.s32.totalorder %v599_v15, 2048  ;;  %vm290_vm12 = vcmp.lt.s32.totalorder %v602_v16, 2048 }
  0x34   :  { %v464_v56 = vpop.eup %463  ;;  %vm291_vm13 = vcmp.lt.s32.totalorder %v605_v25, 2048  ;;  %vm292_vm14 = vcmp.lt.s32.totalorder %v276_v40, 2048  ;;  %vm293_vm15 = vcmp.lt.s32.totalorder %v277_v52, 2048  ;;  %v294_v3 = vsel %vm286_vm8, %v214_v38, 0.0 }
  0x35   :  { %v204_v9 = vsel %vm637_vm6, %v201_v41, %v198_v51  ;;  %v207_v10 = vmul.f32 0.6931472, %v464_v56  ;;  %v295_v11 = vsel %vm287_vm9, %v215_v44, 0.0  ;;  %v296_v12 = vsel %vm288_vm10, %v216_v48, 0.0 }
  0x36   :  { %v220_v14 = vadd.f32 %v204_v9, %v579_v59  ;;  %v297_v45 = vsel %vm289_vm11, %v217_v49, 0.0  ;;  %v298_v57 = vsel %vm290_vm12, %v218_v33, 0.0  ;;  %v299_v54 = vsel %vm291_vm13, %v219_v55, 0.0 }
  0x37   :  { %v213_v15 = vsel %vm644_vm7, %v210_v50, %v207_v10  ;;  %v329_v16 = vrot.slane %v294_v3, 4  ;;  %v335_v58 = vrot.slane %v295_v11, 4  ;;  %v341_v25 = vrot.slane %v296_v12, 4 }
  0x38   :  { %v221_v60 = vadd.f32 %v213_v15, %v581_v62  ;;  %v300_v61 = vsel %vm292_vm14, %v220_v14, 0.0  ;;  %v347_v63 = vrot.slane %v297_v45, 4  ;;  %v353_v0 = vrot.slane %v298_v57, 4 }
  0x39   :  { %v330_v1 = vadd.f32 %v329_v16, %v294_v3  ;;  %v336_v2 = vadd.f32 %v335_v58, %v295_v11  ;;  %v342_v4 = vadd.f32 %v341_v25, %v296_v12  ;;  %v359_v5 = vrot.slane %v299_v54, 4 }
  0x3a   :  { %v301_v59 = vsel %vm293_vm15, %v221_v60, 0.0  ;;  %v348_v6 = vadd.f32 %v347_v63, %v297_v45  ;;  %v354_v7 = vadd.f32 %v353_v0, %v298_v57  ;;  %v365_v8 = vrot.slane %v300_v61, 4 }
  0x3b   :  { %v331_v13 = vrot.slane %v330_v1, 2  ;;  %v337_v17 = vrot.slane %v336_v2, 2  ;;  %v343_v18 = vrot.slane %v342_v4, 2  ;;  %v360_v19 = vadd.f32 %v359_v5, %v299_v54 }
  0x3c   :  { %v349_v20 = vrot.slane %v348_v6, 2  ;;  %v355_v21 = vrot.slane %v354_v7, 2  ;;  %v366_v62 = vadd.f32 %v365_v8, %v300_v61  ;;  %v371_v22 = vrot.slane %v301_v59, 4 }
  0x3d   :  { %v332_v23 = vadd.f32 %v331_v13, %v330_v1  ;;  %v338_v24 = vadd.f32 %v337_v17, %v336_v2  ;;  %v344_v26 = vadd.f32 %v343_v18, %v342_v4  ;;  %v361_v27 = vrot.slane %v360_v19, 2 }
  0x3e   :  { %v350_v28 = vadd.f32 %v349_v20, %v348_v6  ;;  %v356_v29 = vadd.f32 %v355_v21, %v354_v7  ;;  %v367_v30 = vrot.slane %v366_v62, 2  ;;  %v372_v31 = vadd.f32 %v371_v22, %v301_v59 }
  0x3f   :  { %v333_v34 = vrot.slane %v332_v23, 1  ;;  %v339_v37 = vrot.slane %v338_v24, 1  ;;  %v345_v32 = vrot.slane %v344_v26, 1  ;;  %v362_v36 = vadd.f32 %v361_v27, %v360_v19 }
  0x40   :  { %v351_v38 = vrot.slane %v350_v28, 1  ;;  %v357_v39 = vrot.slane %v356_v29, 1  ;;  %v368_v41 = vadd.f32 %v367_v30, %v366_v62  ;;  %v373_v42 = vrot.slane %v372_v31, 2 }
  0x41   :  { %v334_v43 = vadd.f32 %v333_v34, %v332_v23  ;;  %v340_v44 = vadd.f32 %v339_v37, %v338_v24  ;;  %v346_v46 = vadd.f32 %v345_v32, %v344_v26  ;;  %v363_v47 = vrot.slane %v362_v36, 1 }
  0x42   :  { %v352_v48 = vadd.f32 %v351_v38, %v350_v28  ;;  %v358_v49 = vadd.f32 %v357_v39, %v356_v29  ;;  %v369_v50 = vrot.slane %v368_v41, 1  ;;  %v374_v33 = vadd.f32 %v373_v42, %v372_v31 }
  0x43   :  { %v364_v40 = vadd.f32 %v363_v47, %v362_v36  ;;  %v385_v52 = vrot.slane %v340_v44, 7  ;;  %v386_v53 = vrot.slane %v346_v46, 6  ;;  %vm392_vm0 = vcmask 1040384  }
  0x44   :  { %v370_v35 = vadd.f32 %v369_v50, %v368_v41  ;;  %v375_v51 = vrot.slane %v374_v33, 1  ;;  %v387_v55 = vrot.slane %v352_v48, 5  ;;  %v388_v56 = vrot.slane %v358_v49, 4 }
  0x45   :  { %v389_v3 = vrot.slane %v364_v40, 3  ;;  %v393_v9 = vsel %vm392_vm0, %v334_v43, %v385_v52  ;;  %vm394_vm1 = vcmask 1042434   ;;  %vm396_vm2 = vcmask 1041408  }
  0x46   :  { %v376_v10 = vadd.f32 %v375_v51, %v374_v33  ;;  %v390_v11 = vrot.slane %v370_v35, 2  ;;  %v395_v12 = vsel %vm394_vm1, %v386_v53, %v387_v55  ;;  %vm398_vm3 = vcmask 1044484  }
  0x47   :  { %vm400_vm4 = vcmask 1046534   ;;  %v399_v45 = vsel %vm398_vm3, %v388_v56, %v389_v3  ;;  %vm402_vm5 = vcmask 1045508   ;;  %v397_v57 = vsel %vm396_vm2, %v393_v9, %v395_v12 }
  0x48   :  { %v391_v14 = vrot.slane %v376_v10, 1  ;;  %vm404_vm6 = vcmask 1043456  }
  0x4a   :  { %v401_v54 = vsel %vm400_vm4, %v390_v11, %v391_v14 }
  0x4b   :  { %v403_v15 = vsel %vm402_vm5, %v399_v45, %v401_v54 }
  0x4c   :  { %v405_v16 = vsel %vm404_vm6, %v397_v57, %v403_v15 }
  0x4d   :  { %407 = vst [vmem:[#allocation8] sm:$0xff] %v405_v16 }
  0x4e   :  { %418 = dma.vmem_to_hbm [thread:$0]  %s414_s1, 128, %s416_s21, [#allocation5]  }
  0x4f   :  { %541 = dma.done.wait [#allocation5], 128  }
  0x50   :  { %542 = vsyncadd [#allocation5], 4294967168 }
  0x51   :  { %423 = vsyncpa [#allocation4], 1 }
  0x52   :  { %424 = vsyncpa [#allocation7], 1 }
  0x53   :  { %425 = vsyncpa [#allocation5], 1 }

</bundles_post_ra>
